<compile_context>
chip_gen: v5e
topology: v5e:2x2
jax: 0.10.0
libtpu: 0.0.40
codegen_flags: <defaults>
</compile_context>

<pallas_src>
import functools

import jax
import jax.numpy as jnp
from jax.experimental import pallas as pl
from jax.experimental.pallas import tpu as pltpu

EPS = 1e-6


# ------------------------------ tiling helper -------------------------------

def _tile(dim, preferred):
    """Pick the largest MXU-friendly tile that divides `dim` (full dim fallback)."""
    for t in (preferred, 512, 256, 128):
        if t <= dim and dim % t == 0:
            return t
    return dim


_MM_SEMANTICS = pltpu.CompilerParams(
    dimension_semantics=("parallel", "parallel", "arbitrary"))


# ----------------------------- Pallas kernels ------------------------------

def _rmsnorm_kernel(x_ref, w_ref, o_ref, *, eps):
    x = x_ref[...].astype(jnp.float32)
    var = jnp.mean(x * x, axis=-1, keepdims=True)
    inv = jax.lax.rsqrt(var + eps)
    o_ref[...] = (x * inv * w_ref[...].astype(jnp.float32)).astype(o_ref.dtype)


def _add_rmsnorm_kernel(x_ref, r_ref, w_ref, o_ref, r_out_ref, *, eps):
    s = x_ref[...].astype(jnp.float32) + r_ref[...].astype(jnp.float32)
    r_out_ref[...] = s                                  # residual kept in f32
    var = jnp.mean(s * s, axis=-1, keepdims=True)
    inv = jax.lax.rsqrt(var + eps)
    o_ref[...] = (s * inv * w_ref[...].astype(jnp.float32)).astype(o_ref.dtype)


def _matmul_kernel(x_ref, w_ref, o_ref, acc_ref):
    @pl.when(pl.program_id(2) == 0)
    def _():
        acc_ref[...] = jnp.zeros_like(acc_ref)
    acc_ref[...] += jnp.dot(x_ref[...], w_ref[...],
                            preferred_element_type=jnp.float32)
    @pl.when(pl.program_id(2) == pl.num_programs(2) - 1)
    def _():
        o_ref[...] = acc_ref[...].astype(o_ref.dtype)


def _matmul_bias_kernel(x_ref, w_ref, b_ref, o_ref, acc_ref):
    @pl.when(pl.program_id(2) == 0)
    def _():
        acc_ref[...] = jnp.zeros_like(acc_ref)
    acc_ref[...] += jnp.dot(x_ref[...], w_ref[...],
                            preferred_element_type=jnp.float32)
    @pl.when(pl.program_id(2) == pl.num_programs(2) - 1)
    def _():
        o_ref[...] = (acc_ref[...] +
                      b_ref[...].astype(jnp.float32)).astype(o_ref.dtype)


def _flash_attn_kernel(q_ref, k_ref, v_ref, o_ref, m_sc, l_sc, acc_sc, *, scale):
    qi = pl.program_id(1)
    ki = pl.program_id(2)
    tq = q_ref.shape[1]
    tkv = k_ref.shape[1]

    @pl.when(ki == 0)
    def _():
        m_sc[...] = jnp.full_like(m_sc, -jnp.inf)
        l_sc[...] = jnp.zeros_like(l_sc)
        acc_sc[...] = jnp.zeros_like(acc_sc)

    # Skip kv tiles that lie entirely above the causal diagonal.
    @pl.when(ki * tkv < (qi + 1) * tq)
    def _():
        q = q_ref[0]                                   # (tq, d)  bf16
        k = k_ref[0]                                   # (tkv, d) bf16
        v = v_ref[0]                                   # (tkv, d) bf16
        s = jax.lax.dot_general(q, k, (((1,), (1,)), ((), ())),
                                preferred_element_type=jnp.float32) * scale
        q_pos = qi * tq + jax.lax.broadcasted_iota(jnp.int32, s.shape, 0)
        k_pos = ki * tkv + jax.lax.broadcasted_iota(jnp.int32, s.shape, 1)
        s = jnp.where(k_pos <= q_pos, s, -1e30)        # finite mask value (f32)

        m_prev = m_sc[...]
        m_new = jnp.maximum(m_prev, jnp.max(s, axis=-1, keepdims=True))
        alpha = jnp.exp(m_prev - m_new)
        p = jnp.exp(s - m_new)
        l_sc[...] = alpha * l_sc[...] + jnp.sum(p, axis=-1, keepdims=True)
        acc_sc[...] = alpha * acc_sc[...] + jax.lax.dot_general(
            p.astype(v.dtype), v, (((1,), (0,)), ((), ())),
            preferred_element_type=jnp.float32)
        m_sc[...] = m_new

    @pl.when(ki == pl.num_programs(2) - 1)
    def _():
        inv_l = pl.reciprocal(l_sc[...], approx=True)
        o_ref[0] = (acc_sc[...] * inv_l).astype(o_ref.dtype)


def _silu_mul_matmul_kernel(g_ref, u_ref, w_ref, o_ref, acc_ref):
    @pl.when(pl.program_id(2) == 0)
    def _():
        acc_ref[...] = jnp.zeros_like(acc_ref)
    g = g_ref[...].astype(jnp.float32)
    u = u_ref[...].astype(jnp.float32)
    h = (g * jax.nn.sigmoid(g)) * u                    # SiLU(gate) * up, f32 VPU/EUP
    acc_ref[...] += jnp.dot(h.astype(w_ref.dtype), w_ref[...],
                            preferred_element_type=jnp.float32)
    @pl.when(pl.program_id(2) == pl.num_programs(2) - 1)
    def _():
        o_ref[...] = acc_ref[...].astype(o_ref.dtype)


# ------------------------------ thin wrappers -------------------------------

def rmsnorm(x, w, eps=EPS, *, tr=256):
    s, h = x.shape
    tr = _tile(s, tr)
    return pl.pallas_call(
        functools.partial(_rmsnorm_kernel, eps=eps),
        grid=(s // tr,),
        in_specs=[pl.BlockSpec((tr, h), lambda i: (i, 0)),
                  pl.BlockSpec((1, h), lambda i: (0, 0))],
        out_specs=pl.BlockSpec((tr, h), lambda i: (i, 0)),
        out_shape=jax.ShapeDtypeStruct((s, h), x.dtype),
        compiler_params=pltpu.CompilerParams(dimension_semantics=("parallel",)),
    )(x, w.reshape(1, h))


def add_rmsnorm(x, residual, w, eps=EPS, *, tr=256):
    s, h = x.shape
    tr = _tile(s, tr)
    return pl.pallas_call(
        functools.partial(_add_rmsnorm_kernel, eps=eps),
        grid=(s // tr,),
        in_specs=[pl.BlockSpec((tr, h), lambda i: (i, 0)),
                  pl.BlockSpec((tr, h), lambda i: (i, 0)),
                  pl.BlockSpec((1, h), lambda i: (0, 0))],
        out_specs=[pl.BlockSpec((tr, h), lambda i: (i, 0)),
                   pl.BlockSpec((tr, h), lambda i: (i, 0))],
        out_shape=(jax.ShapeDtypeStruct((s, h), x.dtype),
                   jax.ShapeDtypeStruct((s, h), jnp.float32)),   # f32 residual
        compiler_params=pltpu.CompilerParams(dimension_semantics=("parallel",)),
    )(x, residual, w.reshape(1, h))


def linear(x, w, b=None, *, tm=256, tn=256, tk=512):
    m, kdim = x.shape
    n = w.shape[1]
    tm = _tile(m, tm)
    tn = _tile(n, tn)
    tk = _tile(kdim, tk)
    grid = (m // tm, n // tn, kdim // tk)
    x_spec = pl.BlockSpec((tm, tk), lambda i, j, k: (i, k))
    w_spec = pl.BlockSpec((tk, tn), lambda i, j, k: (k, j))
    o_spec = pl.BlockSpec((tm, tn), lambda i, j, k: (i, j))
    scratch = [pltpu.VMEM((tm, tn), jnp.float32)]
    if b is None:
        return pl.pallas_call(
            _matmul_kernel, grid=grid,
            in_specs=[x_spec, w_spec], out_specs=o_spec,
            out_shape=jax.ShapeDtypeStruct((m, n), x.dtype),
            scratch_shapes=scratch, compiler_params=_MM_SEMANTICS,
        )(x, w)
    b_spec = pl.BlockSpec((1, tn), lambda i, j, k: (0, j))
    return pl.pallas_call(
        _matmul_bias_kernel, grid=grid,
        in_specs=[x_spec, w_spec, b_spec], out_specs=o_spec,
        out_shape=jax.ShapeDtypeStruct((m, n), x.dtype),
        scratch_shapes=scratch, compiler_params=_MM_SEMANTICS,
    )(x, w, b.reshape(1, n))


def flash_attention(q, k, v, scale, *, tq=256, tkv=256):
    h, s, d = q.shape
    tq = _tile(s, tq)
    tkv = _tile(s, tkv)
    grid = (h, s // tq, s // tkv)
    return pl.pallas_call(
        functools.partial(_flash_attn_kernel, scale=scale),
        grid=grid,
        in_specs=[pl.BlockSpec((1, tq, d), lambda hh, i, j: (hh, i, 0)),
                  pl.BlockSpec((1, tkv, d), lambda hh, i, j: (hh, j, 0)),
                  pl.BlockSpec((1, tkv, d), lambda hh, i, j: (hh, j, 0))],
        out_specs=pl.BlockSpec((1, tq, d), lambda hh, i, j: (hh, i, 0)),
        out_shape=jax.ShapeDtypeStruct((h, s, d), q.dtype),
        scratch_shapes=[pltpu.VMEM((tq, 1), jnp.float32),
                        pltpu.VMEM((tq, 1), jnp.float32),
                        pltpu.VMEM((tq, d), jnp.float32)],
        compiler_params=_MM_SEMANTICS,
    )(q, k, v)


def silu_mul_down(gate_up, w, inter, *, tm=256, tn=256, tk=512):
    m = gate_up.shape[0]
    n = w.shape[1]
    tm = _tile(m, tm)
    tn = _tile(n, tn)
    tk = _tile(inter, tk)
    kblocks = inter // tk
    grid = (m // tm, n // tn, kblocks)
    return pl.pallas_call(
        _silu_mul_matmul_kernel,
        grid=grid,
        in_specs=[
            # gate half: columns [0, inter)
            pl.BlockSpec((tm, tk), lambda i, j, k: (i, k)),
            # up half: columns [inter, 2*inter) -- same buffer, offset index_map
            pl.BlockSpec((tm, tk), lambda i, j, k, _kb=kblocks: (i, k + _kb)),
            pl.BlockSpec((tk, tn), lambda i, j, k: (k, j)),
        ],
        out_specs=pl.BlockSpec((tm, tn), lambda i, j, k: (i, j)),
        out_shape=jax.ShapeDtypeStruct((m, n), gate_up.dtype),
        scratch_shapes=[pltpu.VMEM((tm, tn), jnp.float32)],
        compiler_params=_MM_SEMANTICS,
    )(gate_up, gate_up, w)


# ------------------------------ RoPE (glue) ---------------------------------

def apply_rope(x, positions, head_dim, base):
    # GPT-NeoX style rotate-half rotary (vLLM get_rope default, rotary_dim == head_dim).
    s, hd_total = x.shape
    nh = hd_total // head_dim
    half = head_dim // 2
    xr = x.reshape(s, nh, head_dim).astype(jnp.float32)
    inv_freq = 1.0 / (base ** (jnp.arange(0, half, dtype=jnp.float32) / half))
    freqs = positions.astype(jnp.float32)[:, None] * inv_freq[None, :]   # [S, half]
    cos = jnp.cos(freqs)[:, None, :]
    sin = jnp.sin(freqs)[:, None, :]
    x1, x2 = xr[..., :half], xr[..., half:]
    out = jnp.concatenate([x1 * cos - x2 * sin, x2 * cos + x1 * sin], axis=-1)
    return out.reshape(s, hd_total).astype(x.dtype)


# ---------------------------- QWenBlock forward ------------------------------

def init_qwen_block_params(key, hidden_size, num_heads, intermediate_size,
                           dtype=jnp.bfloat16):
    """intermediate_size is config.intermediate_size; MLP uses half of it."""
    head_dim = hidden_size // num_heads
    mlp_inter = intermediate_size // 2
    keys = jax.random.split(key, 5)
    scale = 0.02

    def rnd(k, shape):
        return (scale * jax.random.normal(k, shape, jnp.float32)).astype(dtype)

    return {
        'hidden_size': hidden_size,
        'num_heads': num_heads,
        'head_dim': head_dim,
        'mlp_inter': mlp_inter,
        'rope_theta': 10000.0,
        'ln_1_w': jnp.ones((hidden_size,), jnp.float32),
        'ln_2_w': jnp.ones((hidden_size,), jnp.float32),
        # c_attn: QKVParallelLinear (bias=True), stored [in, out]
        'c_attn_w': rnd(keys[0], (hidden_size, 3 * hidden_size)),
        'c_attn_b': rnd(keys[1], (3 * hidden_size,)),
        # attention output proj (bias=False)
        'c_proj_w': rnd(keys[2], (hidden_size, hidden_size)),
        # MLP merged gate/up proj (bias=False)
        'gate_up_w': rnd(keys[3], (hidden_size, 2 * mlp_inter)),
        # MLP down proj (bias=False)
        'mlp_c_proj_w': rnd(keys[4], (mlp_inter, hidden_size)),
    }


def qwen_block_forward(params, positions, hidden_states, residual=None):
    hsz = params['hidden_size']
    nh = params['num_heads']
    hd = params['head_dim']
    seq = hidden_states.shape[0]

    # ln_1 (+ fused residual add, vLLM RMSNorm semantics); residual stream in f32.
    if residual is None:
        residual = hidden_states.astype(jnp.float32)
        hidden = rmsnorm(hidden_states, params['ln_1_w'])
    else:
        hidden, residual = add_rmsnorm(hidden_states, residual, params['ln_1_w'])

    # --- attention ---
    qkv = linear(hidden, params['c_attn_w'], params['c_attn_b'])       # [S, 3H]
    q, k, v = jnp.split(qkv, 3, axis=-1)                               # each [S, H]
    q = apply_rope(q, positions, hd, params['rope_theta'])
    k = apply_rope(k, positions, hd, params['rope_theta'])

    def to_hsd(x):
        return x.reshape(seq, nh, hd).transpose(1, 0, 2)               # [nh, S, hd]

    attn = flash_attention(to_hsd(q), to_hsd(k), to_hsd(v), scale=hd ** -0.5)
    attn = attn.transpose(1, 0, 2).reshape(seq, hsz)
    attn = linear(attn, params['c_proj_w'])                            # [S, H]

    # ln_2 + residual
    hidden, residual = add_rmsnorm(attn, residual, params['ln_2_w'])

    # --- MLP: gate_up -> fused SiLU*mul + down projection ---
    gate_up = linear(hidden, params['gate_up_w'])                      # [S, 2*I]
    out = silu_mul_down(gate_up, params['mlp_c_proj_w'], params['mlp_inter'])

    return out, residual


# ------------------------------------ main -----------------------------------

if __name__ == "__main__":
    hidden_size = 64
    num_heads = 4
    intermediate_size = 256   # config.intermediate_size; MLP inner = 128
    seq = 16
    dtype = jnp.bfloat16

    key = jax.random.PRNGKey(0)
    kp, kx = jax.random.split(key)
    params = init_qwen_block_params(kp, hidden_size, num_heads, intermediate_size,
                                    dtype=dtype)

    hidden_states = jax.random.normal(kx, (seq, hidden_size), jnp.float32).astype(dtype)
    positions = jnp.arange(seq, dtype=jnp.int32)

    # First layer (residual is None) ...
    h1, r1 = qwen_block_forward(params, positions, hidden_states, residual=None)
    # ... then feed back to exercise the fused add+RMSNorm path.
    h2, r2 = qwen_block_forward(params, positions, h1, residual=r1)

    jax.block_until_ready((h1, r1, h2, r2))
    assert h2.shape == (seq, hidden_size) and r2.shape == (seq, hidden_size)
    assert bool(jnp.all(jnp.isfinite(h2.astype(jnp.float32))))
    assert bool(jnp.all(jnp.isfinite(r2)))
    print("KERNEL_OK")
</pallas_src>

<mosaic_0001>
module attributes {stable_mosaic.version = 11 : i64} {
  func.func @_rmsnorm_kernel(%arg0: i32, %arg1: memref<16x64xbf16, #tpu.memory_space<vmem>>, %arg2: memref<1x64xf32, #tpu.memory_space<vmem>>, %arg3: memref<16x64xbf16, #tpu.memory_space<vmem>>) attributes {dimension_semantics = [#tpu.dimension_semantics<parallel>], iteration_bounds = array<i64: 1>, scalar_prefetch = 0 : i64, scratch_operands = 0 : i64, tpu.core_type = #tpu.core_type<tc>, window_params = [{transform_indices = @transform_0, window_bounds = array<i64: 16, 64>}, {pipeline_mode = #tpu.pipeline_mode<synchronous>, transform_indices = @transform_1, window_bounds = array<i64: 1, 64>}, {transform_indices = @transform_2, window_bounds = array<i64: 16, 64>}]} {
    %c0 = arith.constant 0 : index
    %c0_0 = arith.constant 0 : index
    %0 = vector.load %arg1[%c0, %c0_0] : memref<16x64xbf16, #tpu.memory_space<vmem>>, vector<16x64xbf16>
    %1 = arith.extf %0 : vector<16x64xbf16> to vector<16x64xf32>
    %2 = arith.mulf %1, %1 : vector<16x64xf32>
    %cst = arith.constant dense<0.000000e+00> : vector<16xf32>
    %3 = vector.multi_reduction <add>, %2, %cst [1] : vector<16x64xf32> to vector<16xf32>
    %4 = vector.shape_cast %3 : vector<16xf32> to vector<16x1xf32>
    %cst_1 = arith.constant 6.400000e+01 : f32
    %5 = vector.broadcast %cst_1 : f32 to vector<16x1xf32>
    %6 = arith.divf %4, %5 : vector<16x1xf32>
    %cst_2 = arith.constant 9.99999997E-7 : f32
    %7 = vector.broadcast %cst_2 : f32 to vector<16x1xf32>
    %8 = arith.addf %6, %7 : vector<16x1xf32>
    %9 = math.rsqrt %8 : vector<16x1xf32>
    %10 = vector.broadcast %9 : vector<16x1xf32> to vector<16x64xf32>
    %11 = arith.mulf %1, %10 : vector<16x64xf32>
    %c0_3 = arith.constant 0 : index
    %c0_4 = arith.constant 0 : index
    %12 = vector.load %arg2[%c0_3, %c0_4] : memref<1x64xf32, #tpu.memory_space<vmem>>, vector<1x64xf32>
    %13 = vector.broadcast %12 : vector<1x64xf32> to vector<16x64xf32>
    %14 = arith.mulf %11, %13 : vector<16x64xf32>
    %15 = arith.truncf %14 : vector<16x64xf32> to vector<16x64xbf16>
    %c0_5 = arith.constant 0 : index
    %c0_6 = arith.constant 0 : index
    %16 = vector.load %arg3[%c0_5, %c0_6] : memref<16x64xbf16, #tpu.memory_space<vmem>>, vector<16x64xbf16>
    tpu.vector_store %arg3[%c0_5, %c0_6], %15 {strides = array<i32>} : memref<16x64xbf16, #tpu.memory_space<vmem>>, vector<16x64xbf16>,
    return
  }
  func.func @transform_0(%arg0: i32) -> (i32, i32) {
    %c0_i32 = arith.constant 0 : i32
    %c0_i32_0 = arith.constant 0 : i32
    return %arg0, %c0_i32 : i32, i32
  }
  func.func @transform_1(%arg0: i32) -> (i32, i32) {
    %c0_i32 = arith.constant 0 : i32
    %c0_i32_0 = arith.constant 0 : i32
    %c0_i32_1 = arith.constant 0 : i32
    return %c0_i32, %c0_i32_0 : i32, i32
  }
  func.func @transform_2(%arg0: i32) -> (i32, i32) {
    %c0_i32 = arith.constant 0 : i32
    %c0_i32_0 = arith.constant 0 : i32
    return %arg0, %c0_i32 : i32, i32
  }
}

</mosaic_0001>

<bundles_post_ra>
// kernel: tpu_custom_call.1
= control target key start
LH: loop header
LB: loop body
LE: loop exit
PB: predicated region body
PF: predicated region fallthrough
CT: control target
= control target key end

     0   :  { %7 = vsyncpa [#allocation3], 0  ;;  %s250_s0 = inlined_call_operand.hbm [shape: bf16[16,64], index: 0, kind: input, shape index: {}]   ;;  %s251_s1 = inlined_call_operand.hbm [shape: f32[1,64], index: 1, kind: input, shape index: {}]   ;;  %s252_s2 = inlined_call_operand.hbm [shape: bf16[16,64], index: 2, kind: output, shape index: {}]  }
   0x1   :  { %8 = vsyncpa [#allocation6], 0 }
   0x2   :  { %9 = vsyncpa [#allocation4], 0  ;;  %s14_s11 = sshll.u32 %s250_s0, 4  ;;  %s214_s12 = smov [#allocation2]   ;;  %s15_s11 = int_to_ptr.hbm [resolvable:$true] %s14_s11 }
   0x3   :  { %s16_s13 = sshll.u32 %s214_s12, 4  ;;  %s28_s16 = sshll.u32 %s251_s1, 4  ;;  %s17_s13 = int_to_ptr.vmem [resolvable:$true] %s16_s13  ;;  %s29_s16 = int_to_ptr.hbm [resolvable:$true] %s28_s16 }
   0x4   :  { %s215_s17 = smov 64   ;;  %s216_s18 = smov 4  }
   0x5   :  { %22 = dma.hbm_to_vmem [thread:$0]  %s15_s11, 128, %s17_s13, [#allocation3], %s215_s17, %s215_s17, %s216_s18  }
   0x6   :  { %s217_s19 = smov [#allocation5]  }
   0x7   :  { %s30_s20 = sshll.u32 %s217_s19, 4  ;;  %s31_s20 = int_to_ptr.vmem [resolvable:$true] %s30_s20 }
   0x8   :  { %33 = dma.hbm_to_vmem [thread:$0]  %s29_s16, 16, %s31_s20, [#allocation6]  }
   0x9   :  { %208 = dma.done.wait [#allocation3], 128  }
   0xa   :  { %209 = vsyncadd [#allocation3], 4294967168 }
   0xb   :  { %210 = dma.done.wait [#allocation6], 16  }
   0xc   :  { %211 = vsyncadd [#allocation6], 4294967280  ;;  %v120_v0 = vld [vmem:[#allocation2] sm:$0xff]   ;;  %vm48_vm0 = vcmask 523264   ;;  %v218_v7 = vmov 64.0   ;;  %vm96_vm6 = vcmask 519168  }
   0xd   :  { %v121_v1 = vunpack.c.l.bf16 %v120_v0  ;;  %v122_v3 = vunpack.c.h.bf16 %v120_v0  ;;  %130 = vrcp.f32 %v218_v7  ;;  %v129_v28 = vld [vmem:[#allocation5] ss:$0 sm:$0xff]  ;;  %s219_s0 = smov [#allocation7]   ;;  %s105_s23 = sshll.u32 %s252_s2, 4  ;;  %s106_s23 = int_to_ptr.hbm [resolvable:$true] %s105_s23 }
   0xe   :  { %s103_s1 = sshll.u32 %s219_s0, 4  ;;  %s104_s1 = int_to_ptr.vmem [resolvable:$true] %s103_s1 }
   0xf   :  { %v46_v2 = vmul.f32 %v121_v1, %v121_v1  ;;  %v47_v5 = vmul.f32 %v122_v3, %v122_v3 }
  0x11   :  { %v49_v4 = vsel %vm48_vm0, %v46_v2, 0.0  ;;  %v52_v6 = vsel %vm48_vm0, %v47_v5, 0.0 }
  0x12   :  { %50 = vadd.xlane.f32.xlu0 %v49_v4 }
  0x13   :  { %v131_v8 = vpop.eup %130 }
  0x14   :  { %v56_v9 = vmul.f32 64.0, %v131_v8  ;;  %vm60_vm1 = vweird.f32 %v131_v8 }
  0x16   :  { %v57_v10 = vsub.f32 1.0, %v56_v9 }
  0x18   :  { %v58_v11 = vmul.f32 %v131_v8, %v57_v10 }
  0x1a   :  { %53 = vadd.xlane.f32.xlu0 %v52_v6  ;;  %v59_v12 = vadd.f32 %v131_v8, %v58_v11 }
  0x1c   :  { %v61_v13 = vsel %vm60_vm1, %v131_v8, %v59_v12 }
  0x85   :  { %v51_v14 = vpop.xlane.xlu0 %50 }
  0x86   :  { %v62_v15 = vmul.f32 %v61_v13, %v51_v14 }
  0x88   :  { %v64_v16 = vadd.f32 1e-06, %v62_v15 }
  0x8a   :  { %132 = vrsqrt.f32 %v64_v16  ;;  %vm72_vm3 = vweird.f32 %v64_v16 }
  0x8d   :  { %v54_v17 = vpop.xlane.xlu0 %53 }
  0x8e   :  { %v63_v18 = vmul.f32 %v61_v13, %v54_v17 }
  0x90   :  { %v133_v19 = vpop.eup %132  ;;  %v65_v20 = vadd.f32 1e-06, %v63_v18 }
  0x91   :  { %v67_v21 = vmul.f32 %v133_v19, %v64_v16  ;;  %vm73_vm2 = vweird.f32 %v133_v19 }
  0x92   :  { %134 = vrsqrt.f32 %v65_v20  ;;  %vm74_vm4 = vmor %vm72_vm3, %vm73_vm2  ;;  %vm82_vm7 = vweird.f32 %v65_v20 }
  0x93   :  { %v68_v22 = vmul.f32 %v133_v19, %v67_v21 }
  0x95   :  { %v69_v23 = vmul.f32 0.5, %v68_v22 }
  0x97   :  { %v70_v24 = vsub.f32 1.5, %v69_v23 }
  0x98   :  { %v135_v25 = vpop.eup %134 }
  0x99   :  { %v71_v26 = vmul.f32 %v133_v19, %v70_v24  ;;  %v77_v27 = vmul.f32 %v135_v25, %v65_v20  ;;  %vm83_vm5 = vweird.f32 %v135_v25 }
  0x9a   :  { %vm84_vm8 = vmor %vm82_vm7, %vm83_vm5 }
  0x9b   :  { %v75_v29 = vsel %vm74_vm4, %v133_v19, %v71_v26  ;;  %v78_v30 = vmul.f32 %v135_v25, %v77_v27 }
  0x9c   :  { %v86_v31 = vmul.f32 %v121_v1, %v75_v29 }
  0x9d   :  { %v79_v32 = vmul.f32 0.5, %v78_v30 }
  0x9e   :  { %v92_v33 = vmul.f32 %v129_v28, %v86_v31 }
  0x9f   :  { %v80_v34 = vsub.f32 1.5, %v79_v32 }
  0xa0   :  { %v94_v35 = vpack.c.bf16 %v92_v33, %v92_v33 }
  0xa1   :  { %v81_v36 = vmul.f32 %v135_v25, %v80_v34 }
  0xa2   :  { %97 = vst.msk [vmem:[#allocation7] sm:$0xf] %vm96_vm6, %v94_v35 }
  0xa3   :  { %v85_v37 = vsel %vm84_vm8, %v135_v25, %v81_v36 }
  0xa4   :  { %v87_v38 = vmul.f32 %v122_v3, %v85_v37 }
  0xa6   :  { %v93_v39 = vmul.f32 %v129_v28, %v87_v38 }
  0xa8   :  { %v95_v40 = vpack.c.bf16 %v93_v39, %v93_v39 }
  0xaa   :  { %98 = vst.msk [vmem:[#allocation7 + $0x4] sm:$0xf] %vm96_vm6, %v95_v40 }
  0xab   :  { %111 = dma.vmem_to_hbm [thread:$0]  %s104_s1, 128, %s106_s23, [#allocation4], %s215_s17, %s215_s17, %s216_s18  }
  0xac   :  { %212 = dma.done.wait [#allocation4], 128  }
  0xad   :  { %213 = vsyncadd [#allocation4], 4294967168 }
  0xae   :  { %116 = vsyncpa [#allocation3], 1 }
  0xaf   :  { %117 = vsyncpa [#allocation6], 1 }
  0xb0   :  { %118 = vsyncpa [#allocation4], 1 }

</bundles_post_ra>
